<compile_context>
chip_gen: v7x
topology: tpu7x:2x2x1
jax: 0.10.0
libtpu: 0.0.40
codegen_flags: <defaults>
</compile_context>

<pallas_src>
import functools

import jax
import jax.numpy as jnp
from jax.experimental import pallas as pl
from jax.experimental.pallas import tpu as pltpu

# Older JAX spelled this TPUCompilerParams; prefer the current name.
_CompilerParams = getattr(pltpu, "CompilerParams",
                          getattr(pltpu, "TPUCompilerParams", None))


# --------------------------------------------------------------------------- #
# Kernel: one grid step == (batch element, head).  The FFN + final store run
# on the last head step once the attention accumulator is complete.
# --------------------------------------------------------------------------- #
def _block_kernel(x_ref, wq_e_ref, wq_o_ref, wk_e_ref, wk_o_ref, wv_ref,
                  wout_ref, cos_ref, sin_ref, w1_ref, b1_ref, w2_ref, b2_ref,
                  o_ref, acc_ref, *, nheads, hidden_chunk):
    n = pl.program_id(1)
    T = x_ref.shape[1]

    x = x_ref[0]                                   # (T, D) f32
    x_bf = x.astype(jnp.bfloat16)

    @pl.when(n == 0)
    def _():
        acc_ref[...] = x                           # residual term

    cos = cos_ref[...]                             # (T, hd//2) f32
    sin = sin_ref[...]

    # Per-head projections: bf16 operands, f32 MXU accumulation.  Q weights
    # already carry the 1/sqrt(head_dim) scale; even/odd RoPE halves are
    # separate weight slabs, so no lane slicing is needed in-kernel.
    qe = jnp.dot(x_bf, wq_e_ref[0], preferred_element_type=jnp.float32)
    qo = jnp.dot(x_bf, wq_o_ref[0], preferred_element_type=jnp.float32)
    ke = jnp.dot(x_bf, wk_e_ref[0], preferred_element_type=jnp.float32)
    ko = jnp.dot(x_bf, wk_o_ref[0], preferred_element_type=jnp.float32)
    v = jnp.dot(x_bf, wv_ref[0], preferred_element_type=jnp.float32)  # (T, hd)

    # RoPE (pure VPU): rotated_even = e*cos - o*sin ; rotated_odd = o*cos + e*sin
    qa = qe * cos - qo * sin
    qb = qo * cos + qe * sin
    ka = ke * cos - ko * sin
    kb = ko * cos + ke * sin

    # logits = q_rot . k_rot^T, decomposed over the two rotated halves
    # (no concatenation needed; dot product is invariant to the split).
    dn = (((1,), (1,)), ((), ()))
    logits = jax.lax.dot_general(qa.astype(jnp.bfloat16), ka.astype(jnp.bfloat16),
                                 dn, preferred_element_type=jnp.float32)
    logits = logits + jax.lax.dot_general(qb.astype(jnp.bfloat16),
                                          kb.astype(jnp.bfloat16),
                                          dn, preferred_element_type=jnp.float32)

    # Causal mask (lower triangle incl. diagonal allowed) + softmax in f32.
    row = jax.lax.broadcasted_iota(jnp.int32, (T, T), 0)
    col = jax.lax.broadcasted_iota(jnp.int32, (T, T), 1)
    logits = jnp.where(col <= row, logits, jnp.float32(-1e30))
    m = jnp.max(logits, axis=-1, keepdims=True)
    p = jnp.exp(logits - m)
    p = p * pl.reciprocal(jnp.sum(p, axis=-1, keepdims=True), approx=True)

    attn_out = jnp.dot(p.astype(jnp.bfloat16), v.astype(jnp.bfloat16),
                       preferred_element_type=jnp.float32)        # (T, hd)

    # Per-head slice of the output projection, accumulated with the residual.
    acc_ref[...] += jnp.dot(attn_out.astype(jnp.bfloat16), wout_ref[0],
                            preferred_element_type=jnp.float32)

    @pl.when(n == nheads - 1)
    def _():
        x1 = acc_ref[...]                          # (T, D) f32: x + attn proj
        x1_bf = x1.astype(jnp.bfloat16)
        hdim = w1_ref.shape[1]
        y = x1 + b2_ref[...]
        # Stream the FFN hidden dimension; the (T, 4D) f32 hidden is never
        # fully materialized.
        for c0 in range(0, hdim, hidden_chunk):
            c1 = min(c0 + hidden_chunk, hdim)
            h = jnp.dot(x1_bf, w1_ref[:, c0:c1],
                        preferred_element_type=jnp.float32) + b1_ref[:, c0:c1]
            h = jnp.maximum(h, 0.0)
            h = h * h                              # relu(x)^2, f32 VPU
            y = y + jnp.dot(h.astype(jnp.bfloat16), w2_ref[c0:c1, :],
                            preferred_element_type=jnp.float32)
        o_ref[0] = y


# --------------------------------------------------------------------------- #
# Wrapper: host-side layout plumbing (per-head weight split, transposes, bf16
# cast) + pallas_call.  Jit-able; does not block.
# --------------------------------------------------------------------------- #
def block_forward(x, qkv_proj, wout, w1, b1, w2, b2, cos, sin, *,
                  nheads, head_dim):
    B, T, D = x.shape
    hd = head_dim
    hd2 = hd // 2
    H = nheads * hd
    assert hd % 2 == 0
    assert qkv_proj.shape == (3, H, D)
    assert wout.shape == (D, H)
    assert cos.shape == (T, hd2) and sin.shape == (T, hd2), \
        "rotary tables must match the sequence length (T == maxseqlen)"

    scale = jnp.float32(hd) ** -0.5
    to_bf = lambda a: a.astype(jnp.bfloat16)

    # ---- layout plumbing only (no per-token compute) -------------------------
    wq = qkv_proj[0].reshape(nheads, hd, D)
    wk = qkv_proj[1].reshape(nheads, hd, D)
    wv = qkv_proj[2].reshape(nheads, hd, D)
    # (nheads, D, hd//2): even / odd output dims, x @ w layout; scale folded
    # into the Q weights so no (T, T) logit scaling is needed in-kernel.
    wq_e = to_bf(jnp.transpose(wq[:, 0::2, :], (0, 2, 1)) * scale)
    wq_o = to_bf(jnp.transpose(wq[:, 1::2, :], (0, 2, 1)) * scale)
    wk_e = to_bf(jnp.transpose(wk[:, 0::2, :], (0, 2, 1)))
    wk_o = to_bf(jnp.transpose(wk[:, 1::2, :], (0, 2, 1)))
    wv_t = to_bf(jnp.transpose(wv, (0, 2, 1)))                      # (nh, D, hd)
    wout_h = to_bf(jnp.transpose(wout.reshape(D, nheads, hd), (1, 2, 0)))  # (nh, hd, D)
    w1_t = to_bf(w1.T)                                              # (D, 4D)
    w2_t = to_bf(w2.T)                                              # (4D, D)
    b1_r = b1.reshape(1, -1).astype(jnp.float32)
    b2_r = b2.reshape(1, -1).astype(jnp.float32)
    cos_f = cos.astype(jnp.float32)
    sin_f = sin.astype(jnp.float32)

    hdim = w1_t.shape[1]
    hidden_chunk = min(hdim, 512)

    kernel = functools.partial(_block_kernel, nheads=nheads,
                               hidden_chunk=hidden_chunk)

    head_spec = lambda shape: pl.BlockSpec((1,) + shape, lambda b, n: (n, 0, 0))
    const_spec = lambda shape: pl.BlockSpec(shape, lambda b, n: (0,) * len(shape))

    in_specs = [
        pl.BlockSpec((1, T, D), lambda b, n: (b, 0, 0)),   # x
        head_spec((D, hd2)),                               # wq_e  (bf16, scaled)
        head_spec((D, hd2)),                               # wq_o  (bf16, scaled)
        head_spec((D, hd2)),                               # wk_e  (bf16)
        head_spec((D, hd2)),                               # wk_o  (bf16)
        head_spec((D, hd)),                                # wv    (bf16)
        head_spec((hd, D)),                                # wout per head (bf16)
        const_spec((T, hd2)),                              # cos   (f32)
        const_spec((T, hd2)),                              # sin   (f32)
        const_spec((D, hdim)),                             # w1    (bf16)
        const_spec((1, hdim)),                             # b1    (f32)
        const_spec((hdim, D)),                             # w2    (bf16)
        const_spec((1, D)),                                # b2    (f32)
    ]

    # VMEM limit from the actual chip (falls back to the smallest per-core
    # VMEM, v7x = 64 MiB, if the query is unavailable).
    try:
        vmem_cap = int(pltpu.get_tpu_info().vmem_capacity_bytes)
    except Exception:
        vmem_cap = 64 * 2 ** 20
    vmem_limit = max(16 * 2 ** 20, min(100 * 2 ** 20, int(0.70 * vmem_cap)))

    flops = B * (2 * T * D * 3 * H                 # QKV projections
                 + nheads * 2 * T * T * hd * 2     # logits + attn @ V
                 + 2 * T * H * D                   # output projection
                 + 2 * (2 * T * D * hdim))         # FFN
    weight_bytes = sum(int(a.size) * 2 for a in
                       (wq_e, wq_o, wk_e, wk_o, wv_t, wout_h, w1_t, w2_t))
    cost = pl.CostEstimate(flops=int(flops),
                           transcendentals=int(B * nheads * T * T),
                           bytes_accessed=int(2 * B * T * D * 4 + weight_bytes))

    return pl.pallas_call(
        kernel,
        out_shape=jax.ShapeDtypeStruct((B, T, D), jnp.float32),
        grid_spec=pltpu.PrefetchScalarGridSpec(
            num_scalar_prefetch=0,
            grid=(B, nheads),                       # head axis last (reduction)
            in_specs=in_specs,
            out_specs=pl.BlockSpec((1, T, D), lambda b, n: (b, 0, 0)),
            scratch_shapes=[pltpu.VMEM((T, D), jnp.float32)],
        ),
        compiler_params=_CompilerParams(
            dimension_semantics=("parallel", "arbitrary"),
            vmem_limit_bytes=vmem_limit),
        cost_estimate=cost,
    )(x, wq_e, wq_o, wk_e, wk_o, wv_t, wout_h, cos_f, sin_f,
      w1_t, b1_r, w2_t, b2_r)


# --------------------------------------------------------------------------- #
# Pure-JAX reference mirroring the PyTorch module (for correctness checking).
# --------------------------------------------------------------------------- #
def block_reference(x, qkv_proj, wout, w1, b1, w2, b2, cos, sin, *,
                    nheads, head_dim):
    B, T, D = x.shape
    H = nheads * head_dim
    qkv = jnp.einsum('btd,ahd->btah', x, qkv_proj).reshape(B, T, 3 * nheads, head_dim)
    q, k, v = jnp.split(qkv, 3, axis=2)

    def rope(z):
        ze, zo = z[..., 0::2], z[..., 1::2]
        c = cos[None, :, None, :]
        s = sin[None, :, None, :]
        re = ze * c - zo * s
        im = ze * s + zo * c
        return jnp.stack([re, im], axis=-1).reshape(z.shape)

    q, k = rope(q), rope(k)
    logits = jnp.einsum('btnh,bsnh->bnts', q, k) * head_dim ** -0.5
    causal = jnp.tril(jnp.ones((T, T), dtype=bool))
    logits = jnp.where(causal[None, None], logits, -jnp.inf)
    attn = jax.nn.softmax(logits, axis=-1)
    out = jnp.einsum('bnts,bsnd->btnd', attn, v).reshape(B, T, H)
    x1 = x + out @ wout.T
    h = jnp.square(jax.nn.relu(x1 @ w1.T + b1))
    return x1 + h @ w2.T + b2


if __name__ == "__main__":
    # Block(dim, nheads, maxseqlen) => SlowMha(dim, nheads, maxseqlen, dim):
    # head_dim == dim, rotary built over head_dim, T == maxseqlen.
    B, T, D, nheads = 2, 8, 32, 2
    head_dim = D
    H = nheads * head_dim
    maxseqlen = T
    theta = 10000.0

    key = jax.random.PRNGKey(0)
    kx, k0, k1, k2, k3, k4, k5 = jax.random.split(key, 7)

    x = jax.random.normal(kx, (B, T, D), dtype=jnp.float32)

    # Parameter shapes/ranges from the module's __init__.
    std = 0.5 * D ** -0.5
    bound = 3 ** 0.5 * std
    qkv_proj = jax.random.uniform(k0, (3, H, D), jnp.float32, -bound, bound)
    wout = jax.random.uniform(k1, (D, H), jnp.float32, -H ** -0.5, H ** -0.5)
    w1 = jax.random.uniform(k2, (4 * D, D), jnp.float32, -D ** -0.5, D ** -0.5)
    b1 = jax.random.uniform(k3, (4 * D,), jnp.float32, -D ** -0.5, D ** -0.5)
    # NOTE: the module zero-inits proj2.weight; a nonzero weight is used here
    # so the second FFN matmul path is actually exercised by the check.
    w2 = jax.random.uniform(k4, (D, 4 * D), jnp.float32,
                            -(4 * D) ** -0.5, (4 * D) ** -0.5)
    b2 = jax.random.uniform(k5, (D,), jnp.float32,
                            -(4 * D) ** -0.5, (4 * D) ** -0.5)

    # Rotary tables (Llama-style; rotary dim == head_dim == D inside Block).
    half = head_dim // 2
    speed = theta ** (-(jnp.arange(0, head_dim, 2, dtype=jnp.float32)[:half] / head_dim))
    t = jnp.arange(maxseqlen, dtype=jnp.float32)
    freqs = jnp.outer(t, speed)                    # (T, head_dim // 2)
    cos, sin = jnp.cos(freqs), jnp.sin(freqs)

    fwd = jax.jit(functools.partial(block_forward, nheads=nheads, head_dim=head_dim))
    out = jax.block_until_ready(fwd(x, qkv_proj, wout, w1, b1, w2, b2, cos, sin))

    ref = block_reference(x, qkv_proj, wout, w1, b1, w2, b2, cos, sin,
                          nheads=nheads, head_dim=head_dim)

    assert out.shape == (B, T, D), out.shape
    max_err = float(jnp.max(jnp.abs(out - ref)))
    assert jnp.allclose(out, ref, atol=2.5e-2, rtol=2.5e-2), f"max_err={max_err}"
    print("KERNEL_OK")
</pallas_src>

<mosaic_0001>
module attributes {stable_mosaic.version = 11 : i64} {
  func.func @_block_kernel(%arg0: i32, %arg1: i32, %arg2: memref<1x8x32xf32, #tpu.memory_space<vmem>>, %arg3: memref<1x32x16xbf16, #tpu.memory_space<vmem>>, %arg4: memref<1x32x16xbf16, #tpu.memory_space<vmem>>, %arg5: memref<1x32x16xbf16, #tpu.memory_space<vmem>>, %arg6: memref<1x32x16xbf16, #tpu.memory_space<vmem>>, %arg7: memref<1x32x32xbf16, #tpu.memory_space<vmem>>, %arg8: memref<1x32x32xbf16, #tpu.memory_space<vmem>>, %arg9: memref<8x16xf32, #tpu.memory_space<vmem>>, %arg10: memref<8x16xf32, #tpu.memory_space<vmem>>, %arg11: memref<32x128xbf16, #tpu.memory_space<vmem>>, %arg12: memref<1x128xf32, #tpu.memory_space<vmem>>, %arg13: memref<128x32xbf16, #tpu.memory_space<vmem>>, %arg14: memref<1x32xf32, #tpu.memory_space<vmem>>, %arg15: memref<1x8x32xf32, #tpu.memory_space<vmem>>, %arg16: memref<8x32xf32, #tpu.memory_space<vmem>>) attributes {dimension_semantics = [#tpu.dimension_semantics<parallel>, #tpu.dimension_semantics<arbitrary>], iteration_bounds = array<i64: 2, 2>, scalar_prefetch = 0 : i64, scratch_operands = 1 : i64, tpu.core_type = #tpu.core_type<tc>, window_params = [{transform_indices = @transform_0, window_bounds = array<i64: 1, 8, 32>}, {transform_indices = @transform_1, window_bounds = array<i64: 1, 32, 16>}, {transform_indices = @transform_2, window_bounds = array<i64: 1, 32, 16>}, {transform_indices = @transform_3, window_bounds = array<i64: 1, 32, 16>}, {transform_indices = @transform_4, window_bounds = array<i64: 1, 32, 16>}, {transform_indices = @transform_5, window_bounds = array<i64: 1, 32, 32>}, {transform_indices = @transform_6, window_bounds = array<i64: 1, 32, 32>}, {pipeline_mode = #tpu.pipeline_mode<synchronous>, transform_indices = @transform_7, window_bounds = array<i64: 8, 16>}, {pipeline_mode = #tpu.pipeline_mode<synchronous>, transform_indices = @transform_8, window_bounds = array<i64: 8, 16>}, {pipeline_mode = #tpu.pipeline_mode<synchronous>, transform_indices = @transform_9, window_bounds = array<i64: 32, 128>}, {pipeline_mode = #tpu.pipeline_mode<synchronous>, transform_indices = @transform_10, window_bounds = array<i64: 1, 128>}, {pipeline_mode = #tpu.pipeline_mode<synchronous>, transform_indices = @transform_11, window_bounds = array<i64: 128, 32>}, {pipeline_mode = #tpu.pipeline_mode<synchronous>, transform_indices = @transform_12, window_bounds = array<i64: 1, 32>}, {transform_indices = @transform_13, window_bounds = array<i64: 1, 8, 32>}]} {
    %c0 = arith.constant 0 : index
    %c0_0 = arith.constant 0 : index
    %c0_1 = arith.constant 0 : index
    %0 = vector.load %arg2[%c0, %c0_0, %c0_1] : memref<1x8x32xf32, #tpu.memory_space<vmem>>, vector<1x8x32xf32>
    %1 = vector.shape_cast %0 : vector<1x8x32xf32> to vector<8x32xf32>
    %2 = arith.truncf %1 : vector<8x32xf32> to vector<8x32xbf16>
    %c0_i32 = arith.constant 0 : i32
    %3 = arith.cmpi eq, %arg1, %c0_i32 : i32
    %4 = arith.extui %3 : i1 to i32
    %c0_i32_2 = arith.constant 0 : i32
    %5 = arith.cmpi ne, %4, %c0_i32_2 : i32
    scf.if %5 {
      %c0_41 = arith.constant 0 : index
      %c0_42 = arith.constant 0 : index
      %70 = vector.load %arg16[%c0_41, %c0_42] : memref<8x32xf32, #tpu.memory_space<vmem>>, vector<8x32xf32>
      tpu.vector_store %arg16[%c0_41, %c0_42], %1 {strides = array<i32>} : memref<8x32xf32, #tpu.memory_space<vmem>>, vector<8x32xf32>,
    } else {
    }
    %c0_3 = arith.constant 0 : index
    %c0_4 = arith.constant 0 : index
    %6 = vector.load %arg9[%c0_3, %c0_4] : memref<8x16xf32, #tpu.memory_space<vmem>>, vector<8x16xf32>
    %c0_5 = arith.constant 0 : index
    %c0_6 = arith.constant 0 : index
    %7 = vector.load %arg10[%c0_5, %c0_6] : memref<8x16xf32, #tpu.memory_space<vmem>>, vector<8x16xf32>
    %c0_7 = arith.constant 0 : index
    %c0_8 = arith.constant 0 : index
    %c0_9 = arith.constant 0 : index
    %8 = vector.load %arg3[%c0_7, %c0_8, %c0_9] : memref<1x32x16xbf16, #tpu.memory_space<vmem>>, vector<1x32x16xbf16>
    %9 = vector.shape_cast %8 : vector<1x32x16xbf16> to vector<32x16xbf16>
    %cst = arith.constant dense<0.000000e+00> : vector<8x16xf32>
    %10 = tpu.matmul %2, %9, %cst {dimension_numbers = #tpu.dot_dimension_numbers<[1], [0], [0], [1], [0, 0, 1, 1], [], []>} : vector<8x32xbf16>, vector<32x16xbf16>, vector<8x16xf32> -> vector<8x16xf32>
    %c0_10 = arith.constant 0 : index
    %c0_11 = arith.constant 0 : index
    %c0_12 = arith.constant 0 : index
    %11 = vector.load %arg4[%c0_10, %c0_11, %c0_12] : memref<1x32x16xbf16, #tpu.memory_space<vmem>>, vector<1x32x16xbf16>
    %12 = vector.shape_cast %11 : vector<1x32x16xbf16> to vector<32x16xbf16>
    %cst_13 = arith.constant dense<0.000000e+00> : vector<8x16xf32>
    %13 = tpu.matmul %2, %12, %cst_13 {dimension_numbers = #tpu.dot_dimension_numbers<[1], [0], [0], [1], [0, 0, 1, 1], [], []>} : vector<8x32xbf16>, vector<32x16xbf16>, vector<8x16xf32> -> vector<8x16xf32>
    %c0_14 = arith.constant 0 : index
    %c0_15 = arith.constant 0 : index
    %c0_16 = arith.constant 0 : index
    %14 = vector.load %arg5[%c0_14, %c0_15, %c0_16] : memref<1x32x16xbf16, #tpu.memory_space<vmem>>, vector<1x32x16xbf16>
    %15 = vector.shape_cast %14 : vector<1x32x16xbf16> to vector<32x16xbf16>
    %cst_17 = arith.constant dense<0.000000e+00> : vector<8x16xf32>
    %16 = tpu.matmul %2, %15, %cst_17 {dimension_numbers = #tpu.dot_dimension_numbers<[1], [0], [0], [1], [0, 0, 1, 1], [], []>} : vector<8x32xbf16>, vector<32x16xbf16>, vector<8x16xf32> -> vector<8x16xf32>
    %c0_18 = arith.constant 0 : index
    %c0_19 = arith.constant 0 : index
    %c0_20 = arith.constant 0 : index
    %17 = vector.load %arg6[%c0_18, %c0_19, %c0_20] : memref<1x32x16xbf16, #tpu.memory_space<vmem>>, vector<1x32x16xbf16>
    %18 = vector.shape_cast %17 : vector<1x32x16xbf16> to vector<32x16xbf16>
    %cst_21 = arith.constant dense<0.000000e+00> : vector<8x16xf32>
    %19 = tpu.matmul %2, %18, %cst_21 {dimension_numbers = #tpu.dot_dimension_numbers<[1], [0], [0], [1], [0, 0, 1, 1], [], []>} : vector<8x32xbf16>, vector<32x16xbf16>, vector<8x16xf32> -> vector<8x16xf32>
    %c0_22 = arith.constant 0 : index
    %c0_23 = arith.constant 0 : index
    %c0_24 = arith.constant 0 : index
    %20 = vector.load %arg7[%c0_22, %c0_23, %c0_24] : memref<1x32x32xbf16, #tpu.memory_space<vmem>>, vector<1x32x32xbf16>
    %21 = vector.shape_cast %20 : vector<1x32x32xbf16> to vector<32x32xbf16>
    %cst_25 = arith.constant dense<0.000000e+00> : vector<8x32xf32>
    %22 = tpu.matmul %2, %21, %cst_25 {dimension_numbers = #tpu.dot_dimension_numbers<[1], [0], [0], [1], [0, 0, 1, 1], [], []>} : vector<8x32xbf16>, vector<32x32xbf16>, vector<8x32xf32> -> vector<8x32xf32>
    %23 = arith.mulf %10, %6 : vector<8x16xf32>
    %24 = arith.mulf %13, %7 : vector<8x16xf32>
    %25 = arith.subf %23, %24 : vector<8x16xf32>
    %26 = arith.mulf %13, %6 : vector<8x16xf32>
    %27 = arith.mulf %10, %7 : vector<8x16xf32>
    %28 = arith.addf %26, %27 : vector<8x16xf32>
    %29 = arith.mulf %16, %6 : vector<8x16xf32>
    %30 = arith.mulf %19, %7 : vector<8x16xf32>
    %31 = arith.subf %29, %30 : vector<8x16xf32>
    %32 = arith.mulf %19, %6 : vector<8x16xf32>
    %33 = arith.mulf %16, %7 : vector<8x16xf32>
    %34 = arith.addf %32, %33 : vector<8x16xf32>
    %35 = arith.truncf %25 : vector<8x16xf32> to vector<8x16xbf16>
    %36 = arith.truncf %31 : vector<8x16xf32> to vector<8x16xbf16>
    %cst_26 = arith.constant dense<0.000000e+00> : vector<8x8xf32>
    %37 = tpu.matmul %35, %36, %cst_26 {dimension_numbers = #tpu.dot_dimension_numbers<[1], [1], [0], [0], [0, 0, 1, 0], [], []>} : vector<8x16xbf16>, vector<8x16xbf16>, vector<8x8xf32> -> vector<8x8xf32>
    %38 = arith.truncf %28 : vector<8x16xf32> to vector<8x16xbf16>
    %39 = arith.truncf %34 : vector<8x16xf32> to vector<8x16xbf16>
    %cst_27 = arith.constant dense<0.000000e+00> : vector<8x8xf32>
    %40 = tpu.matmul %38, %39, %cst_27 {dimension_numbers = #tpu.dot_dimension_numbers<[1], [1], [0], [0], [0, 0, 1, 0], [], []>} : vector<8x16xbf16>, vector<8x16xbf16>, vector<8x8xf32> -> vector<8x8xf32>
    %41 = arith.addf %37, %40 : vector<8x8xf32>
    %42 = tpu.iota {dimensions = array<i32: 0>} : vector<8x8xi32>
    %43 = tpu.iota {dimensions = array<i32: 1>} : vector<8x8xi32>
    %44 = arith.cmpi sle, %43, %42 : vector<8x8xi32>
    %cst_28 = arith.constant -1.000000e+30 : f32
    %45 = vector.broadcast %cst_28 : f32 to vector<8x8xf32>
    %46 = arith.select %44, %41, %45 : vector<8x8xi1>, vector<8x8xf32>
    %cst_29 = arith.constant dense<0xFF800000> : vector<8xf32>
    %47 = vector.multi_reduction <maximumf>, %46, %cst_29 [1] : vector<8x8xf32> to vector<8xf32>
    %48 = vector.shape_cast %47 : vector<8xf32> to vector<8x1xf32>
    %49 = vector.broadcast %48 : vector<8x1xf32> to vector<8x8xf32>
    %50 = arith.subf %46, %49 : vector<8x8xf32>
    %51 = math.exp %50 : vector<8x8xf32>
    %cst_30 = arith.constant dense<0.000000e+00> : vector<8xf32>
    %52 = vector.multi_reduction <add>, %51, %cst_30 [1] : vector<8x8xf32> to vector<8xf32>
    %53 = vector.shape_cast %52 : vector<8xf32> to vector<8x1xf32>
    %54 = tpu.reciprocal %53 {approx = true} : vector<8x1xf32> -> vector<8x1xf32>
    %55 = vector.broadcast %54 : vector<8x1xf32> to vector<8x8xf32>
    %56 = arith.mulf %51, %55 : vector<8x8xf32>
    %57 = arith.truncf %56 : vector<8x8xf32> to vector<8x8xbf16>
    %58 = arith.truncf %22 : vector<8x32xf32> to vector<8x32xbf16>
    %cst_31 = arith.constant dense<0.000000e+00> : vector<8x32xf32>
    %59 = tpu.matmul %57, %58, %cst_31 {dimension_numbers = #tpu.dot_dimension_numbers<[1], [0], [0], [1], [0, 0, 1, 1], [], []>} : vector<8x8xbf16>, vector<8x32xbf16>, vector<8x32xf32> -> vector<8x32xf32>
    %c0_32 = arith.constant 0 : index
    %c0_33 = arith.constant 0 : index
    %60 = vector.load %arg16[%c0_32, %c0_33] : memref<8x32xf32, #tpu.memory_space<vmem>>, vector<8x32xf32>
    %61 = arith.truncf %59 : vector<8x32xf32> to vector<8x32xbf16>
    %c0_34 = arith.constant 0 : index
    %c0_35 = arith.constant 0 : index
    %c0_36 = arith.constant 0 : index
    %62 = vector.load %arg8[%c0_34, %c0_35, %c0_36] : memref<1x32x32xbf16, #tpu.memory_space<vmem>>, vector<1x32x32xbf16>
    %63 = vector.shape_cast %62 : vector<1x32x32xbf16> to vector<32x32xbf16>
    %cst_37 = arith.constant dense<0.000000e+00> : vector<8x32xf32>
    %64 = tpu.matmul %61, %63, %cst_37 {dimension_numbers = #tpu.dot_dimension_numbers<[1], [0], [0], [1], [0, 0, 1, 1], [], []>} : vector<8x32xbf16>, vector<32x32xbf16>, vector<8x32xf32> -> vector<8x32xf32>
    %65 = arith.addf %60, %64 : vector<8x32xf32>
    %c0_38 = arith.constant 0 : index
    %c0_39 = arith.constant 0 : index
    %66 = vector.load %arg16[%c0_38, %c0_39] : memref<8x32xf32, #tpu.memory_space<vmem>>, vector<8x32xf32>
    tpu.vector_store %arg16[%c0_38, %c0_39], %65 {strides = array<i32>} : memref<8x32xf32, #tpu.memory_space<vmem>>, vector<8x32xf32>,
    %c1_i32 = arith.constant 1 : i32
    %67 = arith.cmpi eq, %arg1, %c1_i32 : i32
    %68 = arith.extui %67 : i1 to i32
    %c0_i32_40 = arith.constant 0 : i32
    %69 = arith.cmpi ne, %68, %c0_i32_40 : i32
    scf.if %69 {
      %c0_41 = arith.constant 0 : index
      %c0_42 = arith.constant 0 : index
      %70 = vector.load %arg16[%c0_41, %c0_42] : memref<8x32xf32, #tpu.memory_space<vmem>>, vector<8x32xf32>
      %71 = arith.truncf %70 : vector<8x32xf32> to vector<8x32xbf16>
      %c0_43 = arith.constant 0 : index
      %c0_44 = arith.constant 0 : index
      %72 = vector.load %arg14[%c0_43, %c0_44] : memref<1x32xf32, #tpu.memory_space<vmem>>, vector<1x32xf32>
      %73 = vector.broadcast %72 : vector<1x32xf32> to vector<8x32xf32>
      %74 = arith.addf %70, %73 : vector<8x32xf32>
      %c0_45 = arith.constant 0 : index
      %c0_46 = arith.constant 0 : index
      %75 = vector.load %arg11[%c0_45, %c0_46] : memref<32x128xbf16, #tpu.memory_space<vmem>>, vector<32x128xbf16>
      %cst_47 = arith.constant dense<0.000000e+00> : vector<8x128xf32>
      %76 = tpu.matmul %71, %75, %cst_47 {dimension_numbers = #tpu.dot_dimension_numbers<[1], [0], [0], [1], [0, 0, 1, 1], [], []>} : vector<8x32xbf16>, vector<32x128xbf16>, vector<8x128xf32> -> vector<8x128xf32>
      %c0_48 = arith.constant 0 : index
      %c0_49 = arith.constant 0 : index
      %77 = vector.load %arg12[%c0_48, %c0_49] : memref<1x128xf32, #tpu.memory_space<vmem>>, vector<1x128xf32>
      %78 = vector.broadcast %77 : vector<1x128xf32> to vector<8x128xf32>
      %79 = arith.addf %76, %78 : vector<8x128xf32>
      %cst_50 = arith.constant 0.000000e+00 : f32
      %80 = vector.broadcast %cst_50 : f32 to vector<8x128xf32>
      %81 = arith.maximumf %79, %80 : vector<8x128xf32>
      %82 = arith.mulf %81, %81 : vector<8x128xf32>
      %83 = arith.truncf %82 : vector<8x128xf32> to vector<8x128xbf16>
      %c0_51 = arith.constant 0 : index
      %c0_52 = arith.constant 0 : index
      %84 = vector.load %arg13[%c0_51, %c0_52] : memref<128x32xbf16, #tpu.memory_space<vmem>>, vector<128x32xbf16>
      %cst_53 = arith.constant dense<0.000000e+00> : vector<8x32xf32>
      %85 = tpu.matmul %83, %84, %cst_53 {dimension_numbers = #tpu.dot_dimension_numbers<[1], [0], [0], [1], [0, 0, 1, 1], [], []>} : vector<8x128xbf16>, vector<128x32xbf16>, vector<8x32xf32> -> vector<8x32xf32>
      %86 = arith.addf %74, %85 : vector<8x32xf32>
      %c0_54 = arith.constant 0 : index
      %c0_55 = arith.constant 0 : index
      %c0_56 = arith.constant 0 : index
      %87 = vector.load %arg15[%c0_54, %c0_55, %c0_56] : memref<1x8x32xf32, #tpu.memory_space<vmem>>, vector<1x8x32xf32>
      %88 = vector.shape_cast %87 : vector<1x8x32xf32> to vector<8x32xf32>
      %89 = vector.shape_cast %86 : vector<8x32xf32> to vector<1x8x32xf32>
      tpu.vector_store %arg15[%c0_54, %c0_55, %c0_56], %89 {strides = array<i32>} : memref<1x8x32xf32, #tpu.memory_space<vmem>>, vector<1x8x32xf32>,
    } else {
    }
    return
  }
  func.func @transform_0(%arg0: i32, %arg1: i32) -> (i32, i32, i32) {
    %c0_i32 = arith.constant 0 : i32
    %c0_i32_0 = arith.constant 0 : i32
    %c0_i32_1 = arith.constant 0 : i32
    return %arg0, %c0_i32, %c0_i32_0 : i32, i32, i32
  }
  func.func @transform_1(%arg0: i32, %arg1: i32) -> (i32, i32, i32) {
    %c0_i32 = arith.constant 0 : i32
    %c0_i32_0 = arith.constant 0 : i32
    %c0_i32_1 = arith.constant 0 : i32
    return %arg1, %c0_i32, %c0_i32_0 : i32, i32, i32
  }
  func.func @transform_2(%arg0: i32, %arg1: i32) -> (i32, i32, i32) {
    %c0_i32 = arith.constant 0 : i32
    %c0_i32_0 = arith.constant 0 : i32
    %c0_i32_1 = arith.constant 0 : i32
    return %arg1, %c0_i32, %c0_i32_0 : i32, i32, i32
  }
  func.func @transform_3(%arg0: i32, %arg1: i32) -> (i32, i32, i32) {
    %c0_i32 = arith.constant 0 : i32
    %c0_i32_0 = arith.constant 0 : i32
    %c0_i32_1 = arith.constant 0 : i32
    return %arg1, %c0_i32, %c0_i32_0 : i32, i32, i32
  }
  func.func @transform_4(%arg0: i32, %arg1: i32) -> (i32, i32, i32) {
    %c0_i32 = arith.constant 0 : i32
    %c0_i32_0 = arith.constant 0 : i32
    %c0_i32_1 = arith.constant 0 : i32
    return %arg1, %c0_i32, %c0_i32_0 : i32, i32, i32
  }
  func.func @transform_5(%arg0: i32, %arg1: i32) -> (i32, i32, i32) {
    %c0_i32 = arith.constant 0 : i32
    %c0_i32_0 = arith.constant 0 : i32
    %c0_i32_1 = arith.constant 0 : i32
    return %arg1, %c0_i32, %c0_i32_0 : i32, i32, i32
  }
  func.func @transform_6(%arg0: i32, %arg1: i32) -> (i32, i32, i32) {
    %c0_i32 = arith.constant 0 : i32
    %c0_i32_0 = arith.constant 0 : i32
    %c0_i32_1 = arith.constant 0 : i32
    return %arg1, %c0_i32, %c0_i32_0 : i32, i32, i32
  }
  func.func @transform_7(%arg0: i32, %arg1: i32) -> (i32, i32) {
    %c0_i32 = arith.constant 0 : i32
    %c0_i32_0 = arith.constant 0 : i32
    %c0_i32_1 = arith.constant 0 : i32
    return %c0_i32, %c0_i32_0 : i32, i32
  }
  func.func @transform_8(%arg0: i32, %arg1: i32) -> (i32, i32) {
    %c0_i32 = arith.constant 0 : i32
    %c0_i32_0 = arith.constant 0 : i32
    %c0_i32_1 = arith.constant 0 : i32
    return %c0_i32, %c0_i32_0 : i32, i32
  }
  func.func @transform_9(%arg0: i32, %arg1: i32) -> (i32, i32) {
    %c0_i32 = arith.constant 0 : i32
    %c0_i32_0 = arith.constant 0 : i32
    %c0_i32_1 = arith.constant 0 : i32
    return %c0_i32, %c0_i32_0 : i32, i32
  }
  func.func @transform_10(%arg0: i32, %arg1: i32) -> (i32, i32) {
    %c0_i32 = arith.constant 0 : i32
    %c0_i32_0 = arith.constant 0 : i32
    %c0_i32_1 = arith.constant 0 : i32
    return %c0_i32, %c0_i32_0 : i32, i32
  }
  func.func @transform_11(%arg0: i32, %arg1: i32) -> (i32, i32) {
    %c0_i32 = arith.constant 0 : i32
    %c0_i32_0 = arith.constant 0 : i32
    %c0_i32_1 = arith.constant 0 : i32
    return %c0_i32, %c0_i32_0 : i32, i32
  }
  func.func @transform_12(%arg0: i32, %arg1: i32) -> (i32, i32) {
    %c0_i32 = arith.constant 0 : i32
    %c0_i32_0 = arith.constant 0 : i32
    %c0_i32_1 = arith.constant 0 : i32
    return %c0_i32, %c0_i32_0 : i32, i32
  }
  func.func @transform_13(%arg0: i32, %arg1: i32) -> (i32, i32, i32) {
    %c0_i32 = arith.constant 0 : i32
    %c0_i32_0 = arith.constant 0 : i32
    %c0_i32_1 = arith.constant 0 : i32
    return %arg0, %c0_i32, %c0_i32_0 : i32, i32, i32
  }
}

</mosaic_0001>

<bundles_post_ra>
// kernel: squeeze.3
= control target key start
LH: loop header
LB: loop body
LE: loop exit
PB: predicated region body
PF: predicated region fallthrough
CT: control target
= control target key end

     0   :  { %vm3_vm0 = vcmask 261120   ;;  %s321_s12 = smov 96   ;;  %s456_s0 = inlined_call_operand.vmem [shape: f32[1,64,32], index: 0, kind: input, shape index: {}]   ;;  %s457_s1 = inlined_call_operand.vmem [shape: f32[2,32,32], index: 1, kind: output, shape index: {}]  }
   0x1   :  { %v287_v0 = vld [vmem:[%s456_s0 + $0x10] sm:$0xff]   ;;  %v27_v1 = vld [vmem:[%s456_s0] sm:$0xff]   ;;  %v288_v2 = vld [vmem:[%s456_s0 + $0x18] sm:$0xff]  }
   0x2   :  { %46 = vrot.lane.b32.xlu1 %v287_v0, %s321_s12  ;;  %28 = vrot.lane.b32.xlu0 %v27_v1, %s321_s12  ;;  %v286_v3 = vld [vmem:[%s456_s0 + $0x8] sm:$0xff]   ;;  %17 = vst.msk [vmem:[#allocation0 + $0x80] ss:$8 sm:$0xf] %vm3_vm0, %v287_v0  }
   0x3   :  { %19 = vst.msk [vmem:[#allocation0 + $0x80] ss:$8 sm:$0xf0] %vm3_vm0, %v287_v0   ;;  %4 = vst.msk [vmem:[#allocation0] ss:$8 sm:$0xf] %vm3_vm0, %v27_v1  }
   0x4   :  { %5 = vst.msk [vmem:[#allocation0] ss:$8 sm:$0xf0] %vm3_vm0, %v27_v1   ;;  %24 = vst.msk [vmem:[#allocation0 + $0xc0] ss:$8 sm:$0xf] %vm3_vm0, %v288_v2  }
   0x5   :  { %26 = vst.msk [vmem:[#allocation0 + $0xc0] ss:$8 sm:$0xf0] %vm3_vm0, %v288_v2   ;;  %10 = vst.msk [vmem:[#allocation0 + $0x40] ss:$8 sm:$0xf] %vm3_vm0, %v286_v3  }
   0x6   :  { %12 = vst.msk [vmem:[#allocation0 + $0x40] ss:$8 sm:$0xf0] %vm3_vm0, %v286_v3   ;;  %55 = vrot.lane.b32.xlu1 %v288_v2, %s321_s12  ;;  %37 = vrot.lane.b32.xlu0 %v286_v3, %s321_s12 }
  0x74   :  { %v47_v4 = vpop.permute.xlu1 %46   ;;  %v29_v5 = vpop.permute.xlu0 %28  }
  0x75   :  { %50 = vst.msk [vmem:[#allocation0 + $0x81] ss:$8 sm:$0xf] %vm3_vm0, %v47_v4   ;;  %52 = vst.msk [vmem:[#allocation0 + $0x81] ss:$8 sm:$0xf0] %vm3_vm0, %v47_v4  }
  0x76   :  { %32 = vst.msk [vmem:[#allocation0 + $0x1] ss:$8 sm:$0xf] %vm3_vm0, %v29_v5   ;;  %34 = vst.msk [vmem:[#allocation0 + $0x1] ss:$8 sm:$0xf0] %vm3_vm0, %v29_v5  }
  0x78   :  { %v56_v6 = vpop.permute.xlu1 %55   ;;  %v38_v7 = vpop.permute.xlu0 %37  }
  0x79   :  { %59 = vst.msk [vmem:[#allocation0 + $0xc1] ss:$8 sm:$0xf] %vm3_vm0, %v56_v6   ;;  %61 = vst.msk [vmem:[#allocation0 + $0xc1] ss:$8 sm:$0xf0] %vm3_vm0, %v56_v6  }
  0x7a   :  { %41 = vst.msk [vmem:[#allocation0 + $0x41] ss:$8 sm:$0xf] %vm3_vm0, %v38_v7   ;;  %43 = vst.msk [vmem:[#allocation0 + $0x41] ss:$8 sm:$0xf0] %vm3_vm0, %v38_v7  }
  0x7c   :  { %v158_v8 = vld [vmem:[#allocation0 + $0x80] sm:$0x3]  ;;  %v164_v9 = vld [vmem:[#allocation0 + $0x88] sm:$0x3]  ;;  %v170_v10 = vld [vmem:[#allocation0 + $0x90] sm:$0x3] }
  0x7d   :  { %304 = vst [vmem:[%s457_s1 + $0x20] sm:$0x3] %v158_v8  ;;  %305 = vst [vmem:[%s457_s1 + $0x22] sm:$0x3] %v164_v9  ;;  %v176_v11 = vld [vmem:[#allocation0 + $0x98] sm:$0x3] }
  0x7e   :  { %306 = vst [vmem:[%s457_s1 + $0x24] sm:$0x3] %v170_v10  ;;  %v182_v12 = vld [vmem:[#allocation0 + $0xa0] sm:$0x3]  ;;  %v188_v13 = vld [vmem:[#allocation0 + $0xa8] sm:$0x3] }
  0x7f   :  { %307 = vst [vmem:[%s457_s1 + $0x26] sm:$0x3] %v176_v11  ;;  %308 = vst [vmem:[%s457_s1 + $0x28] sm:$0x3] %v182_v12  ;;  %v194_v14 = vld [vmem:[#allocation0 + $0xb0] sm:$0x3] }
  0x80   :  { %309 = vst [vmem:[%s457_s1 + $0x2a] sm:$0x3] %v188_v13  ;;  %v200_v15 = vld [vmem:[#allocation0 + $0xb8] sm:$0x3]  ;;  %v65_v16 = vld [vmem:[#allocation0] sm:$0x3] }
  0x81   :  { %310 = vst [vmem:[%s457_s1 + $0x2c] sm:$0x3] %v194_v14  ;;  %311 = vst [vmem:[%s457_s1 + $0x2e] sm:$0x3] %v200_v15  ;;  %v69_v17 = vld [vmem:[#allocation0 + $0x8] sm:$0x3] }
  0x82   :  { %67 = vst [vmem:[%s457_s1] sm:$0x3] %v65_v16  ;;  %v74_v18 = vld [vmem:[#allocation0 + $0x10] sm:$0x3]  ;;  %v80_v19 = vld [vmem:[#allocation0 + $0x18] sm:$0x3] }
  0x83   :  { %289 = vst [vmem:[%s457_s1 + $0x2] sm:$0x3] %v69_v17  ;;  %290 = vst [vmem:[%s457_s1 + $0x4] sm:$0x3] %v74_v18  ;;  %v86_v20 = vld [vmem:[#allocation0 + $0x20] sm:$0x3] }
  0x84   :  { %291 = vst [vmem:[%s457_s1 + $0x6] sm:$0x3] %v80_v19  ;;  %v92_v21 = vld [vmem:[#allocation0 + $0x28] sm:$0x3]  ;;  %v98_v22 = vld [vmem:[#allocation0 + $0x30] sm:$0x3] }
  0x85   :  { %292 = vst [vmem:[%s457_s1 + $0x8] sm:$0x3] %v86_v20  ;;  %293 = vst [vmem:[%s457_s1 + $0xa] sm:$0x3] %v92_v21  ;;  %v104_v23 = vld [vmem:[#allocation0 + $0x38] sm:$0x3] }
  0x86   :  { %294 = vst [vmem:[%s457_s1 + $0xc] sm:$0x3] %v98_v22  ;;  %v206_v24 = vld [vmem:[#allocation0 + $0xc0] sm:$0x3]  ;;  %v212_v25 = vld [vmem:[#allocation0 + $0xc8] sm:$0x3] }
  0x87   :  { %295 = vst [vmem:[%s457_s1 + $0xe] sm:$0x3] %v104_v23  ;;  %312 = vst [vmem:[%s457_s1 + $0x30] sm:$0x3] %v206_v24  ;;  %v218_v26 = vld [vmem:[#allocation0 + $0xd0] sm:$0x3] }
  0x88   :  { %313 = vst [vmem:[%s457_s1 + $0x32] sm:$0x3] %v212_v25  ;;  %v224_v27 = vld [vmem:[#allocation0 + $0xd8] sm:$0x3]  ;;  %v230_v28 = vld [vmem:[#allocation0 + $0xe0] sm:$0x3] }
  0x89   :  { %314 = vst [vmem:[%s457_s1 + $0x34] sm:$0x3] %v218_v26  ;;  %315 = vst [vmem:[%s457_s1 + $0x36] sm:$0x3] %v224_v27  ;;  %v236_v29 = vld [vmem:[#allocation0 + $0xe8] sm:$0x3] }
  0x8a   :  { %316 = vst [vmem:[%s457_s1 + $0x38] sm:$0x3] %v230_v28  ;;  %v242_v30 = vld [vmem:[#allocation0 + $0xf0] sm:$0x3]  ;;  %v248_v31 = vld [vmem:[#allocation0 + $0xf8] sm:$0x3] }
  0x8b   :  { %317 = vst [vmem:[%s457_s1 + $0x3a] sm:$0x3] %v236_v29  ;;  %318 = vst [vmem:[%s457_s1 + $0x3c] sm:$0x3] %v242_v30  ;;  %v110_v32 = vld [vmem:[#allocation0 + $0x40] sm:$0x3] }
  0x8c   :  { %319 = vst [vmem:[%s457_s1 + $0x3e] sm:$0x3] %v248_v31  ;;  %v116_v33 = vld [vmem:[#allocation0 + $0x48] sm:$0x3]  ;;  %v122_v34 = vld [vmem:[#allocation0 + $0x50] sm:$0x3] }
  0x8d   :  { %296 = vst [vmem:[%s457_s1 + $0x10] sm:$0x3] %v110_v32  ;;  %297 = vst [vmem:[%s457_s1 + $0x12] sm:$0x3] %v116_v33  ;;  %v128_v35 = vld [vmem:[#allocation0 + $0x58] sm:$0x3] }
  0x8e   :  { %298 = vst [vmem:[%s457_s1 + $0x14] sm:$0x3] %v122_v34  ;;  %v134_v36 = vld [vmem:[#allocation0 + $0x60] sm:$0x3]  ;;  %v140_v37 = vld [vmem:[#allocation0 + $0x68] sm:$0x3] }
  0x8f   :  { %299 = vst [vmem:[%s457_s1 + $0x16] sm:$0x3] %v128_v35  ;;  %300 = vst [vmem:[%s457_s1 + $0x18] sm:$0x3] %v134_v36  ;;  %v146_v38 = vld [vmem:[#allocation0 + $0x70] sm:$0x3] }
  0x90   :  { %301 = vst [vmem:[%s457_s1 + $0x1a] sm:$0x3] %v140_v37  ;;  %v152_v39 = vld [vmem:[#allocation0 + $0x78] sm:$0x3]  ;;  %302 = vst [vmem:[%s457_s1 + $0x1c] sm:$0x3] %v146_v38 }
  0x91   :  { %303 = vst [vmem:[%s457_s1 + $0x1e] sm:$0x3] %v152_v39 }

// kernel: block_forward.1
= control target key start
LH: loop header
LB: loop body
LE: loop exit
PB: predicated region body
PF: predicated region fallthrough
CT: control target
= control target key end

     0   :  { %s2187_s0 = inlined_call_operand.vmem [shape: f32[2,8,32], index: 0, kind: input, shape index: {}]   ;;  %s2188_s1 = inlined_call_operand.vmem [shape: bf16[2,32,16], index: 1, kind: input, shape index: {}]   ;;  %s2189_s2 = inlined_call_operand.vmem [shape: bf16[2,32,16], index: 2, kind: input, shape index: {}]   ;;  %s2190_s3 = inlined_call_operand.vmem [shape: bf16[2,32,16], index: 3, kind: input, shape index: {}]   ;;  %s2191_s4 = inlined_call_operand.vmem [shape: bf16[2,32,16], index: 4, kind: input, shape index: {}]   ;;  %s2192_s5 = inlined_call_operand.vmem [shape: bf16[2,32,32], index: 5, kind: input, shape index: {}]   ;;  %s2193_s6 = inlined_call_operand.vmem [shape: bf16[2,32,32], index: 6, kind: input, shape index: {}]   ;;  %s2194_s7 = inlined_call_operand.vmem [shape: f32[8,16], index: 7, kind: input, shape index: {}]   ;;  %s2195_s8 = inlined_call_operand.vmem [shape: f32[8,16], index: 8, kind: input, shape index: {}]   ;;  %s2196_s9 = inlined_call_operand.vmem [shape: bf16[32,128], index: 9, kind: input, shape index: {}]   ;;  %s2197_s10 = inlined_call_operand.vmem [shape: f32[1,128], index: 10, kind: input, shape index: {}]   ;;  %s2198_s11 = inlined_call_operand.vmem [shape: bf16[128,32], index: 11, kind: input, shape index: {}]   ;;  %s2199_s12 = inlined_call_operand.vmem [shape: f32[1,32], index: 12, kind: input, shape index: {}]   ;;  %s2200_s13 = inlined_call_operand.hbm [shape: f32[2,8,32], index: 13, kind: output, shape index: {}]  }
   0x1   :  { %2215 = sst [smem:[#allocation18_spill]] %s2199_s12 }
   0x2   :  { %2216 = sst [smem:[#allocation19_spill]] %s2200_s13 }
   0x3   :  { %18 = vsyncpa [#allocation4], 0 }
   0x4   :  { %20 = vsyncpa [#allocation4 + $0x1], 0  ;;  %s1918_s25 = smov 0   ;;  %s1920_s26 = smov 0  }
   0x5   :  { %s1922_s27 = smov 0   ;;  %s1924_s28 = smov 0  }
   0x6   :  { %s1926_s29 = smov 0   ;;  %s1928_s30 = smov 0  }
   0x7   :  { %s1930_s14 = smov 0   ;;  %s1932_s15 = smov 0  }
   0x8 LB: > { %2217 = sst [smem:[#allocation6_spill]] %s1813_s25  ;;  %s1447_s16 = sadd.s32 4294967295, %s1841_s15   ;;  %s1841_s15 = sphi %s1932_s15, %s26_s15   ;;  %s1837_s14 = sphi %s1930_s14, %s2247_s14   ;;  %s1833_s30 = sphi %s1928_s30, %s2246_s30   ;;  %s1829_s29 = sphi %s1926_s29, %s2245_s29   ;;  %s1825_s28 = sphi %s1924_s28, %s2244_s28   ;;  %s1821_s27 = sphi %s1922_s27, %s2243_s27   ;;  %s1817_s26 = sphi %s1920_s26, %s2242_s26   ;;  %s1813_s25 = sphi %s1918_s25, %s2241_s25  }
   0x9   : > { %2218 = sst [smem:[#allocation7_spill]] %s1817_s26  ;;  %s1448_s17 = sadd.s32 4294967294, %s1841_s15  }
   0xa   : > { %2219 = sst [smem:[#allocation8_spill]] %s1821_s27  ;;  %s35_s18 = sadd.s32 1, %s1833_s30 }
   0xb   : > { %2220 = sst [smem:[#allocation9_spill]] %s1829_s29  ;;  %p36_p0 = scmp.ge.s32.totalorder %s35_s18, 2 }
   0xc   : > { %2221 = sst [smem:[#allocation10_spill]] %s1833_s30  ;;  %s38_s19 = sadd.s32 1, %s1837_s14 }
   0xd   : > { %2222 = sst [smem:[#allocation11_spill]] %s1837_s14  ;;  %p363_p1 = scmp.ne.s32.totalorder %s1821_s27, %s1817_s26 }
   0xe   : > { %2223 = sst [smem:[#allocation12_spill]] %s1841_s15  ;;  %p364_p2 = scmp.eq.s32.totalorder %s1447_s16, 3 }
   0xf   : > { %s2249_s18 = smov (%p36_p0, %s35_s18), 0  ;;  %s2251_s19 = smov (!%p36_p0, %s38_s19), %s1837_s14 }
  0x10   : > { %2224 = sst [smem:[#allocation13_spill]] %s2249_s18  ;;  %p1967_p3 = por %p364_p2, %p363_p1 }
  0x11   : > { %p369_p4 = scmp.ne.s32.totalorder %s1817_s26, %s1813_s25  ;;  %p40_p5 = scmp.ge.s32.totalorder %s2251_s19, 2 }
  0x12   : > { %s2225_s20 = scalar_select %p1967_p3, 1, 0 }
  0x13   : > { %p370_p6 = scmp.eq.s32.totalorder %s1448_s17, 3  ;;  %p1451_p7 = scmp.ge.s32.totalorder %s1841_s15, 1 }
  0x14   : > { %2226 = sst [smem:[#allocation14_spill]] %s2225_s20  ;;  %p461_p8 = scmp.lt.s32.totalorder %s1841_s15, 5 }
  0x15   : > { %s2253_s19 = smov (%p40_p5, %s2251_s19), 0  ;;  %p1977_p9 = por %p370_p6, %p369_p4 }
  0x16   : > { %2227 = sst [smem:[#allocation15_spill]] %s2253_s19  ;;  %p462_p10 = pnand %p1451_p7, %p461_p8 }
  0x17   : > { %s2228_s21 = scalar_select %p1977_p9, 1, 0 }
  0x18   : > { %s350_s22 = ssub.s32 %s1837_s14, %s2253_s19  ;;  %s353_s23 = sadd.s32 1, %s1821_s27 }
  0x19   : > { %2229 = sst [smem:[#allocation16_spill]] %s2228_s21  ;;  %p351_p11 = scmp.eq.s32.totalorder %s350_s22, 0 }
  0x1a   : > { %465 = sbr.rel (%p462_p10) target bundleno = 1726 (0x6be), region = 72  ;;  %s2212_s16 = sand.u32 (!%p462_p10), 1, %s1817_s26  }
  0x1b   : > { %s1985_s24 = scalar_select %p351_p11, %s1821_s27, %s353_s23  }
  0x1c   : > { %p534_p12 = scmp.lt.s32.totalorder (!%p462_p10), %s1829_s29, 1  ;;  %s1991_s17 = sshll.u32 (!%p462_p10), %s2212_s16, 3 }
  0x1d   : > { %2230 = sst [smem:[#allocation17_spill]] %s1985_s24  ;;  %p538_p13 = scmp.lt.s32.totalorder (!%p462_p10), %s1825_s28, 1 }
  0x1e   : > { %s533_s26 = scalar_lea.vmem (!%p462_p10), [#allocation3], %s1991_s17  ;;  %p1466_p0 = scmp.ne.s32.totalorder (!%p462_p10), %s1825_s28, 0 }
  0x21   : > { %s535_s18 = scalar_select %p534_p12, %s1829_s29, 1 }
  0x22   : > { %s539_s19 = scalar_select %p538_p13, %s1825_s28, 1 }
  0x23   : > { %s1453_s14 = sshll.u32 %s535_s18, 3  ;;  %574 = sbr.rel (%p1466_p0) target bundleno = 42 (0x2a), region = 76  ;;  %vm575_vm0 = vcmask (!%p1466_p0), 261120  }
  0x24   : > { %s537_s30 = scalar_lea.vmem %s2187_s0, %s1453_s14  ;;  %s1506_s24 = sshll.u32 %s539_s19, 4 }
  0x25   : > { %s542_s25 = scalar_lea.vmem %s2188_s1, %s1506_s24  ;;  %s547_s20 = scalar_lea.vmem %s2189_s2, %s1506_s24  ;;  %v569_v0 = vld [vmem:[%s537_s30] sm:$0xff] }
  0x26   : > { %s2008_s29 = scalar_lea.vmem %s2190_s3, %s1506_s24  ;;  %s2013_s22 = scalar_lea.vmem %s2191_s4, %s1506_s24  ;;  %v2015_v1 = vpack.c.bf16 %v569_v0, %v569_v0  ;;  %576 = vst.msk [vmem:[#allocation2] sm:$0xff] (!%p1466_p0), %vm575_vm0, %v569_v0 }
  0x27   : > { %s2020_s19 = scalar_lea.vmem %s2192_s5, %s1506_s24  ;;  %s2025_s30 = scalar_lea.vmem %s2193_s6, %s1506_s24 }
  0x2a PF: > { %v1721_v2 = vld [vmem:[%s542_s25] sm:$0xff]   ;;  %v1843_v3 = vmov 0.0   ;;  %v1723_v5 = vld [vmem:[%s542_s25 + $0x8] sm:$0xff]   ;;  %vm1844_vm1 = vmmov 0   ;;  %vm595_vm2 = vcmask 261120   ;;  %vm879_vm3 = vcmask 130048  }
  0x2b   : > { %1548 = vmatprep.subr.bf16.mxu0 %v1843_v3  ;;  %1556 = vmatprep.subr.bf16.mxu1 %v1843_v3  ;;  %v1722_v4 = vld [vmem:[%s547_s20] sm:$0xff]   ;;  %v1724_v6 = vld [vmem:[%s547_s20 + $0x8] sm:$0xff]   ;;  %v972_v49 = vlaneseq  ;;  %vm978_vm5 = vcmask 64512   ;;  %vm995_vm6 = vcmask 1043456   ;;  %p1488_p1 = scmp.ne.s32.totalorder %s1825_s28, 1 }
  0x2c   : > { %1549 = vmatpush3.bf16.msra.mxu0 %v1721_v2  ;;  %1552 = vmatprep.mubr.msk.bf16.mxu0 %vm1844_vm1, %v1843_v3  ;;  %v1725_v7 = vld [vmem:[%s2008_s29] sm:$0xff]   ;;  %v1727_v9 = vld [vmem:[%s2008_s29 + $0x8] sm:$0xff]   ;;  %vm1846_vm7 = vmmov (!%p1488_p1), 0   ;;  %s2231_s14 = sld [smem:[#allocation18_spill]] (!%p1488_p1) }
  0x2d   : > { %1557 = vmatpush3.bf16.msra.mxu1 %v1722_v4  ;;  %1550 = vmatprep.subr.bf16.mxu0 %v1843_v3  ;;  %v1726_v8 = vld [vmem:[%s2013_s22] sm:$0xff]   ;;  %v1728_v10 = vld [vmem:[%s2013_s22 + $0x8] sm:$0xff]   ;;  %v973_v50 = vshrl.u32 %v972_v49, 7  ;;  %v975_v51 = vand.u32 127, %v972_v49 }
  0x2e   : > { %1558 = vmatprep.subr.bf16.mxu1 %v1843_v3  ;;  %1560 = vmatprep.mubr.msk.bf16.mxu1 %vm1844_vm1, %v1843_v3  ;;  %v577_v11 = vld [vmem:[%s2194_s7] sm:$0xff]  ;;  %v1730_v48 = vld [vmem:[%s2020_s19 + $0x8] sm:$0xff]  }
  0x2f   : > { %v578_v12 = vld [vmem:[%s2195_s8] sm:$0xff]  ;;  %vm976_vm4 = vcmp.le.s32.totalorder %v975_v51, %v973_v50 }
  0x30   : > { %1551 = vmatpush3.bf16.msra.mxu0 %v1723_v5  ;;  %v1729_v47 = vld [vmem:[%s2020_s19] sm:$0xff]  }
  0x31   : > { %1559 = vmatpush3.bf16.msra.mxu1 %v1724_v6  ;;  %1564 = vmatprep.subr.bf16.mxu0 %v1843_v3 }
  0x32   : > { %1572 = vmatprep.subr.bf16.mxu1 %v1843_v3 }
  0x33   : > { %1553 = vmatmul.mubr.msk.bf16.vlgmr.msra.gmra.mrb[0].mxu0 %vm595_vm2, %v2015_v1 }
  0x34   : > { %1561 = vmatmul.mubr.msk.bf16.vlgmr.msra.gmra.mrb[0].mxu1 %vm595_vm2, %v2015_v1  ;;  %1565 = vmatpush3.bf16.msra.mxu0 %v1725_v7 }
  0x35   : > { %1573 = vmatpush3.bf16.msra.mxu1 %v1726_v8  ;;  %1566 = vmatprep.subr.bf16.mxu0 %v1843_v3 }
  0x36   : > { %1574 = vmatprep.subr.bf16.mxu1 %v1843_v3  ;;  %1568 = vmatprep.mubr.msk.bf16.mxu0 %vm1844_vm1, %v1843_v3 }
  0x37   : > { %1576 = vmatprep.mubr.msk.bf16.mxu1 %vm1844_vm1, %v1843_v3 }
  0x38   : > { %1567 = vmatpush3.bf16.msra.mxu0 %v1727_v9  ;;  %v1731_v9 = vld [vmem:[%s2025_s30] sm:$0xff]  }
  0x39   : > { %1575 = vmatpush3.bf16.msra.mxu1 %v1728_v10  ;;  %1580 = vmatprep.subr.bf16.mxu0 %v1843_v3 }
  0x3a   : > { %1588 = vmatprep.subr.bf16.mxu1 %v1843_v3 }
  0x3b   : > { %1569 = vmatmul.mubr.msk.bf16.vlgmr.msra.gmra.mrb[4].mxu0 %vm595_vm2, %v2015_v1 }
  0x3c   : > { %1577 = vmatmul.mubr.msk.bf16.vlgmr.msra.gmra.mrb[4].mxu1 %vm595_vm2, %v2015_v1  ;;  %1584 = vmatprep.mubr.msk.bf16.mxu0 %vm1844_vm1, %v1843_v3 }
  0x3d   : > { %1590 = vmatprep.mubr.msk.bf16.mxu1 %vm1844_vm1, %v1843_v3  ;;  %1581 = vmatpush3.bf16.msra.mxu0 %v1729_v47 }
  0x3e   : > { %1582 = vmatprep.subr.bf16.mxu0 %v1843_v3 }
  0x41   : > { %1583 = vmatpush3.bf16.msra.mxu0 %v1730_v48 }
  0x42   : > { %1600 = vmatprep.subr.bf16.mxu0 %v1843_v3 }
  0x44   : > { %1585 = vmatmul.mubr.msk.bf16.vlgmr.msra.gmra.mrb[8].mxu0 %vm595_vm2, %v2015_v1 }
  0x45   : > { %1602 = vmatprep.mubr.msk.bf16.mxu0 %vm1844_vm1, %v1843_v3 }
 0x106   : > { %v633_v13 = vpop.f32.mrb[0].mxu0 }
 0x107   : > { %v863_v14 = vmul.f32 %v633_v13, %v577_v11  ;;  %v867_v15 = vmul.f32 %v633_v13, %v578_v12  ;;  %v689_v16 = vpop.f32.mrb[0].mxu1  ;;  %v1554_v17 = vpop.f32.mrb[1].mxu0 }
 0x108   : > { %v864_v18 = vmul.f32 %v689_v16, %v578_v12  ;;  %v866_v19 = vmul.f32 %v689_v16, %v577_v11  ;;  %v1562_v20 = vpop.f32.mrb[1].mxu1  ;;  %v636_v21 = vpop.f32.mrb[2].mxu0  ;;  %v1039_v17 = vld [vmem:[#allocation2] sm:$0xff] }
 0x109   : > { %v692_v22 = vpop.f32.mrb[2].mxu1  ;;  %v1555_v23 = vpop.f32.mrb[3].mxu0 }
 0x10a   : > { %v865_v24 = vsub.f32 %v863_v14, %v864_v18  ;;  %v868_v25 = vadd.f32 %v867_v15, %v866_v19  ;;  %v1563_v26 = vpop.f32.mrb[3].mxu1  ;;  %v1845_v23 = vmov (!%p1488_p1), 0.0  }
 0x10b   : > { %v1739_v26 = vld [vmem:[%s2198_s11] sm:$0xff] (!%p1488_p1)  }
 0x10c   : > { %v877_v44 = vpack.c.bf16 %v868_v25, %v868_v25  ;;  %v875_v46 = vpack.c.bf16 %v865_v24, %v865_v24  ;;  %v1738_v24 = vld [vmem:[%s2196_s9 + $0x8] sm:$0xff] (!%p1488_p1)  }
 0x10e   : > { %v745_v27 = vpop.f32.mrb[4].mxu0 }
 0x10f   : > { %v869_v28 = vmul.f32 %v745_v27, %v577_v11  ;;  %v873_v29 = vmul.f32 %v745_v27, %v578_v12  ;;  %v801_v30 = vpop.f32.mrb[4].mxu1  ;;  %v1570_v31 = vpop.f32.mrb[5].mxu0 }
 0x110   : > { %v870_v32 = vmul.f32 %v801_v30, %v578_v12  ;;  %v872_v33 = vmul.f32 %v801_v30, %v577_v11  ;;  %v1578_v34 = vpop.f32.mrb[5].mxu1  ;;  %v748_v35 = vpop.f32.mrb[6].mxu0  ;;  %v1732_v11 = vld [vmem:[%s2025_s30 + $0x8] sm:$0xff]   ;;  %v1742_v30 = vld [vmem:[%s2198_s11 + $0x18] sm:$0xff] (!%p1488_p1)   ;;  %v1743_v31 = vld [vmem:[%s2198_s11 + $0x20] sm:$0xff] (!%p1488_p1)  }
 0x111   : > { %v804_v36 = vpop.f32.mrb[6].mxu1  ;;  %v1571_v37 = vpop.f32.mrb[7].mxu0  ;;  %v1746_v34 = vld [vmem:[%s2198_s11 + $0x38] sm:$0xff] (!%p1488_p1)   ;;  %v1490_v35 = vld [vmem:[%s2197_s10] ss:$0 sm:$0xff] (!%p1488_p1) }
 0x112   : > { %v871_v38 = vsub.f32 %v869_v28, %v870_v32  ;;  %v874_v39 = vadd.f32 %v873_v29, %v872_v33  ;;  %v1579_v40 = vpop.f32.mrb[7].mxu1  ;;  %v1740_v28 = vld [vmem:[%s2198_s11 + $0x8] sm:$0xff] (!%p1488_p1)   ;;  %v1741_v29 = vld [vmem:[%s2198_s11 + $0x10] sm:$0xff] (!%p1488_p1)  }
 0x113   : > { %v1744_v32 = vld [vmem:[%s2198_s11 + $0x28] sm:$0xff] (!%p1488_p1)   ;;  %v1745_v33 = vld [vmem:[%s2198_s11 + $0x30] sm:$0xff] (!%p1488_p1)  }
 0x114   : > { %v878_v41 = vpack.c.bf16 %v874_v39, %v874_v39  ;;  %v876_v43 = vpack.c.bf16 %v871_v38, %v871_v38 }
 0x116   : > { %v884_v42 = vsel %vm879_vm3, %v878_v41, 0  ;;  %v930_v45 = vsel %vm879_vm3, %v876_v43, 0 }
 0x117   : > { %1589 = vmatpush3.bf16.xpose.msra.mxu1 %v884_v42  ;;  %v857_v63 = vpop.f32.mrb[8].mxu0 }
 0x118   : > { %1594 = vmatprep.subr.bf16.mxu1 %v1843_v3  ;;  %v1586_v0 = vpop.f32.mrb[9].mxu0  ;;  %v991_v4 = vpack.c.bf16 %v857_v63, %v857_v63 }
 0x119   : > { %v860_v1 = vpop.f32.mrb[10].mxu0 }
 0x11a   : > { %v1587_v2 = vpop.f32.mrb[11].mxu0  ;;  %v997_v5 = vsel %vm995_vm6, %v991_v4, 0 }
 0x11b   : > { %1601 = vmatpush3.bf16.msra.mxu0 %v997_v5 }
 0x11c   : > { %1606 = vmatprep.subr.bf16.mxu0 %v1843_v3 }
 0x11e   : > { %1591 = vmatmul.mubr.msk.bf16.vlgmr.msra.gmra.mrb[8].mxu1 %vm879_vm3, %v877_v44  ;;  %v1489_v44 = vld [vmem:[%s2231_s14] ss:$0 sm:$0xff] (!%p1488_p1) }
 0x11f   : > { %1595 = vmatpush3.bf16.xpose.msra.mxu1 %v930_v45  ;;  %1596 = vmatprep.mubr.msk.bf16.mxu1 %vm1844_vm1, %v1843_v3 }
 0x120   : > { %1622 = vmatprep.subr.bf16.mxu1 (!%p1488_p1), %v1845_v23 }
 0x12a   : > { %1597 = vmatmul.mubr.msk.bf16.vlgmr.msra.gmra.mrb[8].mxu1 %vm879_vm3, %v875_v46 }
 0x12b   : > { %1638 = vmatprep.mubr.msk.bf16.mxu1 (!%p1488_p1), %vm1846_vm7, %v1845_v23  ;;  %1623 = vmatpush3.bf16.msra.mxu1 (!%p1488_p1), %v1739_v26 }
 0x12c   : > { %1624 = vmatprep.subr.bf16.mxu1 (!%p1488_p1), %v1845_v23 }
 0x12f   : > { %1625 = vmatpush3.bf16.msra.mxu1 (!%p1488_p1), %v1740_v28 }
 0x130   : > { %1626 = vmatprep.subr.bf16.mxu1 (!%p1488_p1), %v1845_v23 }
 0x133   : > { %1627 = vmatpush3.bf16.msra.mxu1 (!%p1488_p1), %v1741_v29 }
 0x134   : > { %1628 = vmatprep.subr.bf16.mxu1 (!%p1488_p1), %v1845_v23 }
 0x137   : > { %1629 = vmatpush3.bf16.msra.mxu1 (!%p1488_p1), %v1742_v30 }
 0x138   : > { %1630 = vmatprep.subr.bf16.mxu1 (!%p1488_p1), %v1845_v23 }
 0x13b   : > { %1631 = vmatpush3.bf16.msra.mxu1 (!%p1488_p1), %v1743_v31 }
 0x13c   : > { %1632 = vmatprep.subr.bf16.mxu1 (!%p1488_p1), %v1845_v23 }
 0x13f   : > { %1633 = vmatpush3.bf16.msra.mxu1 (!%p1488_p1), %v1744_v32 }
 0x140   : > { %1634 = vmatprep.subr.bf16.mxu1 (!%p1488_p1), %v1845_v23 }
 0x143   : > { %1635 = vmatpush3.bf16.msra.mxu1 (!%p1488_p1), %v1745_v33 }
 0x144   : > { %1636 = vmatprep.subr.bf16.mxu1 (!%p1488_p1), %v1845_v23 }
 0x147   : > { %1637 = vmatpush3.bf16.msra.mxu1 (!%p1488_p1), %v1746_v34 }
 0x1fd   : > { %v966_v52 = vpop.f32.mrb[8].mxu1 }
 0x1fe   : > { %v977_v53 = vsel %vm976_vm4, %v966_v52, -1e+30  ;;  %v1598_v54 = vpop.f32.mrb[9].mxu1 }
 0x1ff   : > { %v969_v55 = vpop.f32.mrb[10].mxu1  ;;  %v979_v56 = vsel %vm978_vm5, %v977_v53, -inf }
 0x200   : > { %980 = vmax.xlane.f32.xlu0 %v979_v56  ;;  %v1599_v57 = vpop.f32.mrb[11].mxu1 }
 0x28d   : > { %v981_v58 = vpop.xlane.xlu0 %980 }
 0x28e   : > { %v982_v59 = vsub.f32 %v977_v53, %v981_v58 }
 0x290   : > { %v983_v60 = vmul.f32 1.442695, %v982_v59 }
 0x292   : > { %1733 = vpow2.f32 %v983_v60 }
 0x29c   : > { %v1734_v61 = vpop.eup %1733 }
 0x29d   : > { %v985_v62 = vsel %vm978_vm5, %v1734_v61, 0.0 }
 0x29e   : > { %986 = vadd.xlane.f32.xlu0 %v985_v62 }
 0x32b   : > { %v987_v6 = vpop.xlane.xlu0 %986 }
 0x32c   : > { %1735 = vrcp.f32 %v987_v6 }
 0x336   : > { %v1736_v7 = vpop.eup %1735 }
 0x337   : > { %v989_v8 = vmul.f32 %v1736_v7, %v1734_v61 }
 0x339   : > { %v990_v10 = vpack.c.bf16 %v989_v8, %v989_v8 }
 0x33b   : > { %1603 = vmatmul.mubr.msk.bf16.vlgmr.msra.gmra.mrb[12].mxu0 %vm978_vm5, %v990_v10 }
 0x33c   : > { %1607 = vmatpush3.bf16.msra.mxu0 %v1731_v9  ;;  %1610 = vmatprep.mubr.msk.bf16.mxu0 %vm1844_vm1, %v1843_v3 }
 0x33d   : > { %1608 = vmatprep.subr.bf16.mxu0 %v1843_v3  ;;  %v1737_v3 = vld [vmem:[%s2196_s9] sm:$0xff] (!%p1488_p1)  }
 0x340   : > { %1609 = vmatpush3.bf16.msra.mxu0 %v1732_v11 }
 0x341   : > { %1614 = vmatprep.subr.bf16.mxu0 (!%p1488_p1), %v1845_v23 }
 0x40e   : > { %v1033_v12 = vpop.f32.mrb[12].mxu0 }
 0x40f   : > { %v1040_v13 = vpack.c.bf16 %v1033_v12, %v1033_v12  ;;  %v1604_v14 = vpop.f32.mrb[13].mxu0 }
 0x410   : > { %v1036_v15 = vpop.f32.mrb[14].mxu0 }
 0x411   : > { %v1605_v16 = vpop.f32.mrb[15].mxu0  ;;  %1611 = vmatmul.mubr.msk.bf16.vlgmr.msra.gmra.mrb[16].mxu0 %vm595_vm2, %v1040_v13 }
 0x412   : > { %1615 = vmatpush3.bf16.msra.mxu0 (!%p1488_p1), %v1737_v3  ;;  %1618 = vmatprep.mubr.msk.bf16.mxu0 (!%p1488_p1), %vm1846_vm7, %v1845_v23 }
 0x413   : > { %1616 = vmatprep.subr.bf16.mxu0 (!%p1488_p1), %v1845_v23 }
 0x416   : > { %1617 = vmatpush3.bf16.msra.mxu0 (!%p1488_p1), %v1738_v24 }
 0x4e1   : > { %1105 = sbr.rel (%p1488_p1) target bundleno = 1700 (0x6a4), region = 80 }
 0x4e4   : > { %v1094_v18 = vpop.f32.mrb[16].mxu0 }
 0x4e5   : > { %v1100_v19 = vadd.f32 %v1094_v18, %v1039_v17  ;;  %v1612_v20 = vpop.f32.mrb[17].mxu0 }
 0x4e6   : > { %v1097_v21 = vpop.f32.mrb[18].mxu0 }
 0x4e7   : > { %1101 = vst.msk [vmem:[#allocation2] sm:$0xff] %vm595_vm2, %v1100_v19  ;;  %v1613_v22 = vpop.f32.mrb[19].mxu0 }
 0x4ee   : > { %v1106_v25 = vld [vmem:[#allocation2] sm:$0xff] }
 0x4ef   : > { %v1107_v27 = vpack.c.bf16 %v1106_v25, %v1106_v25  ;;  %v1115_v45 = vadd.f32 %v1489_v44, %v1106_v25 }
 0x4f1   : > { %1619 = vmatmul.mubr.msk.bf16.vlgmr.msra.gmra.mrb[0].mxu0 %vm595_vm2, %v1107_v27 }
 0x5c4   : > { %v1176_v36 = vpop.f32.mrb[0].mxu0 }
 0x5c5   : > { %v1177_v37 = vadd.f32 %v1490_v35, %v1176_v36  ;;  %v1620_v38 = vpop.f32.mrb[1].mxu0 }
 0x5c6   : > { %v1179_v39 = vpop.f32.mrb[2].mxu0 }
 0x5c7   : > { %v1182_v40 = vmax.f32 %v1177_v37, 0.0  ;;  %v1621_v41 = vpop.f32.mrb[3].mxu0 }
 0x5c9   : > { %v1183_v42 = vmul.f32 %v1182_v40, %v1182_v40 }
 0x5cb   : > { %v1184_v43 = vpack.c.bf16 %v1183_v42, %v1183_v42 }
 0x5cd   : > { %1639 = vmatmul.mubr.bf16.vlgmr.msra.gmra.mrb[0].mxu1 %v1184_v43 }
 0x6a0   : > { %v1283_v46 = vpop.f32.mrb[0].mxu1 }
 0x6a1   : > { %v1289_v47 = vadd.f32 %v1283_v46, %v1115_v45  ;;  %v1640_v48 = vpop.f32.mrb[1].mxu1 }
 0x6a2   : > { %v1286_v49 = vpop.f32.mrb[2].mxu1 }
 0x6a3   : > { %1290 = vst.msk [vmem:[%s533_s26] sm:$0xff] %vm595_vm2, %v1289_v47  ;;  %v1641_v50 = vpop.f32.mrb[3].mxu1 }
 0x6a4 PF: > { %s2232_s27 = sld [smem:[#allocation9_spill]]  ;;  %s2235_s25 = sld [smem:[#allocation19_spill]] }
 0x6a5   : > { %s2233_s19 = sld [smem:[#allocation7_spill]]  ;;  %s1305_s21 = sshll.u32 %s533_s26, 4  ;;  %s1306_s21 = int_to_ptr.vmem [resolvable:$true] %s1305_s21 }
 0x6a6   : > { %s1747_s23 = scalar_lea.vmem %s1306_s21, 128  ;;  %s1847_s18 = smov [#allocation3]  }
 0x6a7   : > { %p1748_p2 = scmp.ne.s32.totalorder %s1306_s21, %s1747_s23  ;;  %s1751_s22 = sshll.u32 %s1847_s18, 4  ;;  %s1752_s22 = int_to_ptr.vmem [resolvable:$false] %s1751_s22 }
 0x6a8   : > { %s1753_s28 = scalar_lea.vmem %s1752_s22, 256  ;;  %p1754_p6 = scmp.lt.s32.totalorder %s1306_s21, %s1752_s22 }
 0x6a9   : > { %p1749_p4 = pnand %p1748_p2, %p1967_p3  ;;  %p1755_p7 = scmp.lt.s32.totalorder %s1753_s28, %s1747_s23 }
 0x6aa   : > { %s1503_s15 = sshll.u32 %s2232_s27, 7  ;;  %s2236_s20 = smov %s2235_s25 }
 0x6ab   : > { %s2136_s29 = scalar_lea.hbm %s2235_s25, %s1503_s15  ;;  %s2237_s24 = sand.u32 1, %s2233_s19  }
 0x6ac   : > { %s1292_s16 = scalar_lea.sflag [#allocation4], %s2237_s24  ;;  %p1750_p5 = pneg %p1749_p4 }
 0x6ad   : > { %p1756_p8 = por %p1755_p7, %p1754_p6 }
 0x6af   : > { %p1757_p10 = pnand %p1756_p8, %p1750_p5 }
 0x6b1   : > { %1760 = shalt.err (!%p1757_p10)
}
 0x6b2   : > { %s1761_s17 = scalar_lea.hbm %s2136_s29, 128  ;;  %s1765_s27 = scalar_lea.hbm %s2236_s20, 256 }
 0x6b3   : > { %p1762_p11 = scmp.ne.s32.totalorder %s2136_s29, %s1761_s17  ;;  %p1766_p0 = scmp.lt.u32.totalorder %s2136_s29, %s2236_s20 }
 0x6b4   : > { %p1767_p1 = scmp.lt.u32.totalorder %s1765_s27, %s1761_s17  ;;  %p1769_p4 = scmp.lt.u32.totalorder %s1761_s17, %s2136_s29 }
 0x6b5   : > { %p1763_p12 = pnand %p1762_p11, %p1967_p3 }
 0x6b6   : > { %p1768_p2 = por %p1767_p1, %p1766_p0 }
 0x6b7   : > { %p1764_p13 = pneg %p1763_p12 }
 0x6b8   : > { %p1770_p5 = por %p1769_p4, %p1768_p2 }
 0x6ba   : > { %p1771_p6 = pnand %p1770_p5, %p1764_p13 }
 0x6bc   : > { %1774 = shalt.err (!%p1771_p6)
}
 0x6bd   : > { %1646 = dma.vmem_to_hbm [thread:$0]  (%p1967_p3), %s1306_s21, 128, %s2136_s29, %s1292_s16  }
 0x6be PF: > { %s2238_s30 = sld [smem:[#allocation12_spill]]  ;;  %s2239_s12 = sld [smem:[#allocation6_spill]] }
 0x6c4   : > { %p1652_p7 = scmp.ge.s32.totalorder %s2238_s30, 2  ;;  %s1317_s24 = sand.u32 1, %s2239_s12  }
 0x6c5   : > { %s1318_s23 = scalar_lea.sflag [#allocation4], %s1317_s24 }
 0x6c6   : > { %p1649_p8 = pnand %p1652_p7, %p1977_p9 }
 0x6c8   : > { %1808 = dma.done.wait (!%p1649_p8), %s1318_s23, 128  }
 0x6c9   : > { %1810 = vsyncadd (!%p1649_p8), %s1318_s23, 4294967168  ;;  %s26_s15 = sadd.s32 1, %s2238_s30   ;;  %s2241_s25 = sld [smem:[#allocation7_spill]] }
 0x6ca   : > { %p23_p10 = scmp.ge.s32.totalorder %s26_s15, 6   ;;  %s2242_s26 = sld [smem:[#allocation8_spill]] }
 0x6cb   : > { %s2243_s27 = sld [smem:[#allocation17_spill]]  ;;  %s2244_s28 = sld [smem:[#allocation10_spill]] }
 0x6cc   : > { %s2245_s29 = sld [smem:[#allocation11_spill]]  ;;  %s2246_s30 = sld [smem:[#allocation13_spill]] }
 0x6cd   : > { %s2247_s14 = sld [smem:[#allocation15_spill]]  ;;  %25 = sbr.rel (!%p23_p10) target bundleno = 8 (0x8), region = 133 }
 0x6d4   :  { %1323 = vsyncpa [#allocation4], 1 }
 0x6d5   :  { %1325 = vsyncpa [#allocation4 + $0x1], 1 }

</bundles_post_ra>
